<compile_context>
chip_gen: v6e
topology: v6e:2x2x1
jax: 0.10.0
libtpu: 0.0.40
codegen_flags: <defaults>
</compile_context>

<pallas_src>
import jax
import jax.numpy as jnp
from jax.experimental import pallas as pl
from jax.experimental.pallas import tpu as pltpu


def _clip_intra_kernel(x_ref, w1_ref, b1_ref, w2_ref, b2_ref, o_ref):
    # x_ref:  (tm, C)  rows of the clip window (f32 or bf16 straight from HBM)
    # w1_ref: (H, C)   conv_first.weight[:, :, 0]      (resident)
    # b1_ref: (H, 1)   conv_first.bias
    # w2_ref: (C, H)   conv_second.weight[:, :, 0]     (resident)
    # b2_ref: (C, 1)   conv_second.bias
    # o_ref:  (C, tm)  lane-dense output tile (rows in lanes)
    x = x_ref[...].astype(jnp.float32)       # `.float()`; bf16 HBM input upcasts after load
    xt = x.T                                 # (C, tm): XLU transpose -> rows in lanes
    h = jnp.dot(w1_ref[...], xt,
                preferred_element_type=jnp.float32)        # conv_first, MXU N = tm
    h = jnp.maximum(h + b1_ref[...], 0.0)                  # bias + ReLU
    y = jnp.dot(w2_ref[...], h,
                preferred_element_type=jnp.float32)        # conv_second, MXU N = tm
    o_ref[...] = (y + b2_ref[...]).astype(o_ref.dtype)


def _pick_tm(M, target=1024, min_grid=4):
    """Pick the row tile (the *lane* dim of the (C, tm) output block).

    - Multiple of 128 so output stores are unmasked, lane-dense vst, unless it
      equals M (full-extent block, always allowed by Pallas).
    - min_grid=4 keeps >= 2 grid steps per TensorCore on v7x megacore so the
      BlockSpec pipeline always has a next block to prefetch.
    - target 1024 amortizes per-step overhead; VMEM footprint at tm=1024 is a
      few MB, far below every generation's limit.
    """
    if M >= 2 * 128:
        tm = (M // min_grid) // 128 * 128
        return max(128, min(target, tm))
    return M


def _mlp_pallas(x2d, w1, b1, w2, b2, *, M, row_offset, tm):
    """x2d: (rows, C).  Computes y^T = W2 @ relu(W1 @ x^T + b1) + b2 for rows
    [row_offset, row_offset + M) of x2d, returned as (C, M) (lane-dense)."""
    C = x2d.shape[1]
    H = w1.shape[0]
    off_blk = row_offset // tm            # static Python int; block-aligned by construction
    grid = (pl.cdiv(M, tm),)              # partial last block: stores are masked

    cost = pl.CostEstimate(
        flops=4 * M * C * H,              # two channel-contraction matmuls
        transcendentals=0,
        bytes_accessed=(M * C * x2d.dtype.itemsize                       # x window (dominant)
                        + int(w1.size + b1.size + w2.size + b2.size) * w1.dtype.itemsize
                        + M * C * 4),                                     # f32 output
    )

    return pl.pallas_call(
        _clip_intra_kernel,
        out_shape=jax.ShapeDtypeStruct((C, M), jnp.float32),
        grid_spec=pltpu.PrefetchScalarGridSpec(
            num_scalar_prefetch=0,
            grid=grid,
            in_specs=[
                pl.BlockSpec((tm, C), lambda i: (off_blk + i, 0)),  # x tile (offset folded in)
                pl.BlockSpec((H, C), lambda i: (0, 0)),             # W1 (stays resident)
                pl.BlockSpec((H, 1), lambda i: (0, 0)),             # b1
                pl.BlockSpec((C, H), lambda i: (0, 0)),             # W2 (stays resident)
                pl.BlockSpec((C, 1), lambda i: (0, 0)),             # b2
            ],
            out_specs=pl.BlockSpec((C, tm), lambda i: (0, i)),       # lane-dense output tile
        ),
        compiler_params=pltpu.CompilerParams(
            dimension_semantics=("parallel",)),
        cost_estimate=cost,
    )(x2d, w1, b1, w2, b2)


def clip_intra_block_forward(x, params, clip_L, inference=True):
    """Mirrors ClipIntraBlock.forward for the inference path.

    x: (S, B, C).  Pass float32 for exact `.float()` parity, or bfloat16 on
       v6e/v7x to halve the dominant HBM byte stream (compute stays f32).
    params: Conv1d-layout weights: conv_first_w (192, C), conv_first_b (192,),
       conv_second_w (C, 192), conv_second_b (C,)  == torch weight[:, :, 0]/bias.
    Returns (intra_x of shape (clip_L, B, C) float32, loss_clip).
    """
    S, B, C = x.shape
    w1 = params["conv_first_w"]
    b1 = params["conv_first_b"]
    w2 = params["conv_second_w"]
    b2 = params["conv_second_b"]
    H = w1.shape[0]

    M = clip_L * B                       # rows of the clip window, ordered (l, b)
    row_offset = (S - clip_L) * B        # first window row in the flat (S*B, C) view

    # permute(1,2,0)[:, :, -clip_L:] == take the last clip_L sequence steps; in
    # the flat row-major view that is just a row offset -> fold into index_map.
    x2d = x.reshape(S * B, C)            # contiguous reshape, no data movement

    tm = _pick_tm(M)
    if (row_offset % tm != 0) or (tm % 8 != 0):
        # Offset not expressible as whole blocks (or tiny ragged M): one
        # contiguous wrapper slice.  Never shrink the lane-dense tm to align it.
        x2d = x2d[row_offset:row_offset + M]
        row_offset = 0

    out_cm = _mlp_pallas(x2d, w1, b1.reshape(H, 1), w2, b2.reshape(C, 1),
                         M=M, row_offset=row_offset, tm=tm)

    intra_x = out_cm.T.reshape(clip_L, B, C)   # (C, M) -> (clip_L, B, C)
    # TODO(synk): training-only intra_contra loss (data-dependent nonzero/randperm) not ported.
    loss_clip = 0.0
    return intra_x, loss_clip


if __name__ == "__main__":
    C = 32                               # self.num_features
    H = 192                              # fixed by the module
    key = jax.random.PRNGKey(0)
    k_w1, k_b1, k_w2, k_b2 = jax.random.split(key, 4)
    params = {
        "conv_first_w": 0.05 * jax.random.normal(k_w1, (H, C), dtype=jnp.float32),
        "conv_first_b": 0.05 * jax.random.normal(k_b1, (H,), dtype=jnp.float32),
        "conv_second_w": 0.05 * jax.random.normal(k_w2, (C, H), dtype=jnp.float32),
        "conv_second_b": 0.05 * jax.random.normal(k_b2, (C,), dtype=jnp.float32),
    }

    def reference(x, clip_L):
        S = x.shape[0]
        xc = x[S - clip_L:].astype(jnp.float32)
        hp = jax.lax.Precision.HIGHEST
        h = jnp.maximum(
            jnp.einsum("lbc,hc->lbh", xc, params["conv_first_w"], precision=hp)
            + params["conv_first_b"], 0.0)
        return (jnp.einsum("lbh,ch->lbc", h, params["conv_second_w"], precision=hp)
                + params["conv_second_b"])

    # Case 1: tiny shape, clip-window offset not tile-aligned -> wrapper-slice
    # fallback, single full-extent block (grid = 1).
    x1 = jax.random.normal(jax.random.PRNGKey(1), (17, 2, C), dtype=jnp.float32)
    y1, l1 = clip_intra_block_forward(x1, params, clip_L=8)
    y1 = jax.block_until_ready(y1)
    assert y1.shape == (8, 2, C)
    assert float(l1) == 0.0
    assert jnp.allclose(y1, reference(x1, 8), atol=2e-3, rtol=2e-3), "case 1 mismatch"

    # Case 2: offset folded into the index_map (row_offset = 256 = 2 blocks),
    # tm = 128, grid = 3 with a masked partial last block (M = 320).
    x2 = jax.random.normal(jax.random.PRNGKey(2), (18, 32, C), dtype=jnp.float32)
    y2, _ = clip_intra_block_forward(x2, params, clip_L=10)
    y2 = jax.block_until_ready(y2)
    assert y2.shape == (10, 32, C)
    assert jnp.allclose(y2, reference(x2, 10), atol=2e-3, rtol=2e-3), "case 2 mismatch"

    # Case 3: bf16 x in HBM (bandwidth opt-in for v6e/v7x); compute stays f32.
    x2_bf16 = x2.astype(jnp.bfloat16)
    y3, _ = clip_intra_block_forward(x2_bf16, params, clip_L=10)
    y3 = jax.block_until_ready(y3)
    assert jnp.allclose(y3, reference(x2_bf16, 10), atol=5e-3, rtol=5e-3), "case 3 mismatch"

    print("KERNEL_OK")
</pallas_src>

<mosaic_0001>
module attributes {stable_mosaic.version = 11 : i64} {
  func.func @_clip_intra_kernel(%arg0: i32, %arg1: memref<16x32xf32, #tpu.memory_space<vmem>>, %arg2: memref<192x32xf32, #tpu.memory_space<vmem>>, %arg3: memref<192x1xf32, #tpu.memory_space<vmem>>, %arg4: memref<32x192xf32, #tpu.memory_space<vmem>>, %arg5: memref<32x1xf32, #tpu.memory_space<vmem>>, %arg6: memref<32x16xf32, #tpu.memory_space<vmem>>) attributes {dimension_semantics = [#tpu.dimension_semantics<parallel>], iteration_bounds = array<i64: 1>, scalar_prefetch = 0 : i64, scratch_operands = 0 : i64, tpu.core_type = #tpu.core_type<tc>, window_params = [{transform_indices = @transform_0, window_bounds = array<i64: 16, 32>}, {pipeline_mode = #tpu.pipeline_mode<synchronous>, transform_indices = @transform_1, window_bounds = array<i64: 192, 32>}, {pipeline_mode = #tpu.pipeline_mode<synchronous>, transform_indices = @transform_2, window_bounds = array<i64: 192, 1>}, {pipeline_mode = #tpu.pipeline_mode<synchronous>, transform_indices = @transform_3, window_bounds = array<i64: 32, 192>}, {pipeline_mode = #tpu.pipeline_mode<synchronous>, transform_indices = @transform_4, window_bounds = array<i64: 32, 1>}, {transform_indices = @transform_5, window_bounds = array<i64: 32, 16>}]} {
    %c0 = arith.constant 0 : index
    %c0_0 = arith.constant 0 : index
    %0 = vector.load %arg1[%c0, %c0_0] : memref<16x32xf32, #tpu.memory_space<vmem>>, vector<16x32xf32>
    %1 = tpu.transpose %0, [1, 0] : vector<16x32xf32> -> vector<32x16xf32>
    %c0_1 = arith.constant 0 : index
    %c0_2 = arith.constant 0 : index
    %2 = vector.load %arg2[%c0_1, %c0_2] : memref<192x32xf32, #tpu.memory_space<vmem>>, vector<192x32xf32>
    %cst = arith.constant dense<0.000000e+00> : vector<192x16xf32>
    %3 = tpu.matmul %2, %1, %cst {dimension_numbers = #tpu.dot_dimension_numbers<[1], [0], [0], [1], [0, 0, 1, 1], [], []>} : vector<192x32xf32>, vector<32x16xf32>, vector<192x16xf32> -> vector<192x16xf32>
    %c0_3 = arith.constant 0 : index
    %c0_4 = arith.constant 0 : index
    %4 = vector.load %arg3[%c0_3, %c0_4] : memref<192x1xf32, #tpu.memory_space<vmem>>, vector<192x1xf32>
    %5 = vector.broadcast %4 : vector<192x1xf32> to vector<192x16xf32>
    %6 = arith.addf %3, %5 : vector<192x16xf32>
    %cst_5 = arith.constant 0.000000e+00 : f32
    %7 = vector.broadcast %cst_5 : f32 to vector<192x16xf32>
    %8 = arith.maximumf %6, %7 : vector<192x16xf32>
    %c0_6 = arith.constant 0 : index
    %c0_7 = arith.constant 0 : index
    %9 = vector.load %arg4[%c0_6, %c0_7] : memref<32x192xf32, #tpu.memory_space<vmem>>, vector<32x192xf32>
    %cst_8 = arith.constant dense<0.000000e+00> : vector<32x16xf32>
    %10 = tpu.matmul %9, %8, %cst_8 {dimension_numbers = #tpu.dot_dimension_numbers<[1], [0], [0], [1], [0, 0, 1, 1], [], []>} : vector<32x192xf32>, vector<192x16xf32>, vector<32x16xf32> -> vector<32x16xf32>
    %c0_9 = arith.constant 0 : index
    %c0_10 = arith.constant 0 : index
    %11 = vector.load %arg5[%c0_9, %c0_10] : memref<32x1xf32, #tpu.memory_space<vmem>>, vector<32x1xf32>
    %12 = vector.broadcast %11 : vector<32x1xf32> to vector<32x16xf32>
    %13 = arith.addf %10, %12 : vector<32x16xf32>
    %c0_11 = arith.constant 0 : index
    %c0_12 = arith.constant 0 : index
    %14 = vector.load %arg6[%c0_11, %c0_12] : memref<32x16xf32, #tpu.memory_space<vmem>>, vector<32x16xf32>
    tpu.vector_store %arg6[%c0_11, %c0_12], %13 {strides = array<i32>} : memref<32x16xf32, #tpu.memory_space<vmem>>, vector<32x16xf32>,
    return
  }
  func.func @transform_0(%arg0: i32) -> (i32, i32) {
    %c0_i32 = arith.constant 0 : i32
    %0 = arith.addi %c0_i32, %arg0 : i32
    %c0_i32_0 = arith.constant 0 : i32
    %c0_i32_1 = arith.constant 0 : i32
    return %0, %c0_i32_0 : i32, i32
  }
  func.func @transform_1(%arg0: i32) -> (i32, i32) {
    %c0_i32 = arith.constant 0 : i32
    %c0_i32_0 = arith.constant 0 : i32
    %c0_i32_1 = arith.constant 0 : i32
    return %c0_i32, %c0_i32_0 : i32, i32
  }
  func.func @transform_2(%arg0: i32) -> (i32, i32) {
    %c0_i32 = arith.constant 0 : i32
    %c0_i32_0 = arith.constant 0 : i32
    %c0_i32_1 = arith.constant 0 : i32
    return %c0_i32, %c0_i32_0 : i32, i32
  }
  func.func @transform_3(%arg0: i32) -> (i32, i32) {
    %c0_i32 = arith.constant 0 : i32
    %c0_i32_0 = arith.constant 0 : i32
    %c0_i32_1 = arith.constant 0 : i32
    return %c0_i32, %c0_i32_0 : i32, i32
  }
  func.func @transform_4(%arg0: i32) -> (i32, i32) {
    %c0_i32 = arith.constant 0 : i32
    %c0_i32_0 = arith.constant 0 : i32
    %c0_i32_1 = arith.constant 0 : i32
    return %c0_i32, %c0_i32_0 : i32, i32
  }
  func.func @transform_5(%arg0: i32) -> (i32, i32) {
    %c0_i32 = arith.constant 0 : i32
    %c0_i32_0 = arith.constant 0 : i32
    return %c0_i32, %arg0 : i32, i32
  }
}

</mosaic_0001>

<bundles_post_ra>
// kernel: tpu_custom_call.1
= control target key start
LH: loop header
LB: loop body
LE: loop exit
PB: predicated region body
PF: predicated region fallthrough
CT: control target
= control target key end

     0   :  { %vm190_vm0 = vcmask 261120   ;;  %v765_v3 = vmov 0   ;;  %v766_v55 = vmov 0.0   ;;  %vm510_vm1 = vcmask 523264   ;;  %s1112_s0 = inlined_call_operand.vmem [shape: f32[16,32], index: 0, kind: input, shape index: {}]   ;;  %s1113_s1 = inlined_call_operand.vmem [shape: f32[192,32], index: 1, kind: input, shape index: {}]   ;;  %s1114_s2 = inlined_call_operand.vmem [shape: f32[192,1], index: 2, kind: input, shape index: {}]   ;;  %s1115_s4 = inlined_call_operand.vmem [shape: f32[32,1], index: 4, kind: input, shape index: {}]   ;;  %s1116_s3 = inlined_call_operand.vmem [shape: f32[32,192], index: 3, kind: input, shape index: {}]   ;;  %s1117_s5 = inlined_call_operand.vmem [shape: f32[32,16], index: 5, kind: output, shape index: {}]  }
   0x1   :  { %v20_v0 = vld [vmem:[%s1112_s0] sm:$0xff]  ;;  %v21_v1 = vld [vmem:[%s1112_s0 + $0x8] sm:$0xff]  ;;  %763 = vset.pattern.permute.xlu0 %v765_v3  ;;  %764 = vset.pattern.permute.xlu1 %v765_v3  ;;  %v24_v5 = vld [vmem:[%s1113_s1 + $0x10] sm:$0xff]  ;;  %vm608_vm2 = vcmask 130048  }
   0x2   :  { %v22_v2 = vld [vmem:[%s1113_s1] sm:$0xff]  ;;  %673 = vmatprep.subr.msk.mxu0 %vm190_vm0, %v21_v1  ;;  %v23_v4 = vld [vmem:[%s1113_s1 + $0x8] sm:$0xff]  ;;  %v61_v6 = vld [vmem:[%s1114_s2 + $0x78] sm:$0xff]  ;;  %713 = vmatprep.subr.mxu1 %v766_v55 }
   0x3   :  { %677 = vmatprep.mubr.msk.f32.mxu0 %vm190_vm0, %v22_v2  ;;  %674 = vmatpush3.xpose.msk.msra.mxu0 %vm190_vm0, %v21_v1  ;;  %v59_v7 = vld [vmem:[%s1114_s2 + $0x68] sm:$0xff]  ;;  %v25_v8 = vld [vmem:[%s1113_s1 + $0x18] sm:$0xff]  ;;  %v60_v9 = vld [vmem:[%s1114_s2 + $0x70] sm:$0xff] }
   0x4   :  { %675 = vmatprep.subr.msk.mxu0 %vm190_vm0, %v20_v0  ;;  %147 = vperm.xlu0 %763, %v61_v6   ;;  %v26_v10 = vld [vmem:[%s1113_s1 + $0x20] sm:$0xff]  ;;  %v27_v12 = vld [vmem:[%s1113_s1 + $0x28] sm:$0xff]  ;;  %v57_v13 = vld [vmem:[%s1114_s2 + $0x58] sm:$0xff] }
   0x5   :  { %137 = vperm.xlu1 %764, %v59_v7   ;;  %v58_v11 = vld [vmem:[%s1114_s2 + $0x60] sm:$0xff]  ;;  %v28_v14 = vld [vmem:[%s1113_s1 + $0x30] sm:$0xff]  ;;  %v29_v16 = vld [vmem:[%s1113_s1 + $0x38] sm:$0xff] }
   0x6   :  { %v56_v15 = vld [vmem:[%s1114_s2 + $0x50] sm:$0xff]  ;;  %v55_v17 = vld [vmem:[%s1114_s2 + $0x48] sm:$0xff]  ;;  %v30_v18 = vld [vmem:[%s1113_s1 + $0x40] sm:$0xff] }
   0x7   :  { %676 = vmatpush3.xpose.msk.msra.mxu0 %vm190_vm0, %v20_v0  ;;  %v54_v19 = vld [vmem:[%s1114_s2 + $0x40] sm:$0xff]  ;;  %v31_v20 = vld [vmem:[%s1113_s1 + $0x48] sm:$0xff]  ;;  %v53_v21 = vld [vmem:[%s1114_s2 + $0x38] sm:$0xff] }
   0x8   :  { %142 = vperm.xlu0 %763, %v60_v9   ;;  %v32_v22 = vld [vmem:[%s1113_s1 + $0x50] sm:$0xff]  ;;  %v33_v24 = vld [vmem:[%s1113_s1 + $0x58] sm:$0xff]  ;;  %v51_v25 = vld [vmem:[%s1114_s2 + $0x28] sm:$0xff]  ;;  %523 = vmatprep.subr.mxu0 %v766_v55 }
   0x9   :  { %132 = vperm.xlu1 %764, %v58_v11   ;;  %v52_v23 = vld [vmem:[%s1114_s2 + $0x30] sm:$0xff]  ;;  %v34_v26 = vld [vmem:[%s1113_s1 + $0x60] sm:$0xff]  ;;  %v35_v28 = vld [vmem:[%s1113_s1 + $0x68] sm:$0xff] }
   0xa   :  { %678 = vmatmul.mubr.msk.f32.vlgmr.msra.gmra.mxu0 %vm190_vm0, %v23_v4  ;;  %v50_v27 = vld [vmem:[%s1114_s2 + $0x20] sm:$0xff]  ;;  %v49_v29 = vld [vmem:[%s1114_s2 + $0x18] sm:$0xff]  ;;  %v36_v30 = vld [vmem:[%s1113_s1 + $0x70] sm:$0xff] }
   0xb   :  { %680 = vmatprep.mubr.msk.f32.mxu0 %vm190_vm0, %v24_v5  ;;  %v48_v31 = vld [vmem:[%s1114_s2 + $0x10] sm:$0xff]  ;;  %v37_v32 = vld [vmem:[%s1113_s1 + $0x78] sm:$0xff]  ;;  %v47_v33 = vld [vmem:[%s1114_s2 + $0x8] sm:$0xff] }
   0xc   :  { %127 = vperm.xlu0 %763, %v57_v13   ;;  %v38_v34 = vld [vmem:[%s1113_s1 + $0x80] sm:$0xff]  ;;  %v39_v36 = vld [vmem:[%s1113_s1 + $0x88] sm:$0xff]  ;;  %v69_v37 = vld [vmem:[%s1114_s2 + $0xb8] sm:$0xff] }
   0xd   :  { %122 = vperm.xlu1 %764, %v56_v15   ;;  %v46_v35 = vld [vmem:[%s1114_s2] sm:$0xff]  ;;  %v40_v38 = vld [vmem:[%s1113_s1 + $0x90] sm:$0xff]  ;;  %v41_v40 = vld [vmem:[%s1113_s1 + $0x98] sm:$0xff] }
   0xe   :  { %681 = vmatmul.mubr.msk.f32.gmra.mxu0 %vm190_vm0, %v25_v8  ;;  %v68_v39 = vld [vmem:[%s1114_s2 + $0xb0] sm:$0xff]  ;;  %v67_v41 = vld [vmem:[%s1114_s2 + $0xa8] sm:$0xff]  ;;  %v42_v42 = vld [vmem:[%s1113_s1 + $0xa0] sm:$0xff] }
   0xf   :  { %683 = vmatprep.mubr.msk.f32.mxu0 %vm190_vm0, %v26_v10  ;;  %v66_v43 = vld [vmem:[%s1114_s2 + $0xa0] sm:$0xff]  ;;  %v43_v44 = vld [vmem:[%s1113_s1 + $0xa8] sm:$0xff]  ;;  %v65_v45 = vld [vmem:[%s1114_s2 + $0x98] sm:$0xff] }
  0x10   :  { %117 = vperm.xlu0 %763, %v55_v17   ;;  %v44_v46 = vld [vmem:[%s1113_s1 + $0xb0] sm:$0xff]  ;;  %v45_v48 = vld [vmem:[%s1113_s1 + $0xb8] sm:$0xff]  ;;  %v63_v49 = vld [vmem:[%s1114_s2 + $0x88] sm:$0xff] }
  0x11   :  { %112 = vperm.xlu1 %764, %v54_v19   ;;  %v64_v47 = vld [vmem:[%s1114_s2 + $0x90] sm:$0xff]  ;;  %v62_v50 = vld [vmem:[%s1114_s2 + $0x80] sm:$0xff]  ;;  %v487_v52 = vld [vmem:[%s1115_s4 + $0x8] sm:$0xff] }
  0x12   :  { %684 = vmatmul.mubr.msk.f32.gmra.mxu0 %vm190_vm0, %v27_v12  ;;  %v486_v51 = vld [vmem:[%s1115_s4] sm:$0xff]  ;;  %v488_v53 = vld [vmem:[%s1115_s4 + $0x10] sm:$0xff]  ;;  %v489_v54 = vld [vmem:[%s1115_s4 + $0x18] sm:$0xff] }
  0x13   :  { %686 = vmatprep.mubr.msk.f32.mxu0 %vm190_vm0, %v28_v14  ;;  %v479_v56 = vld [vmem:[%s1116_s3 + $0x8] sm:$0xff]  ;;  %v481_v57 = vld [vmem:[%s1116_s3 + $0x18] sm:$0xff] }
  0x14   :  { %107 = vperm.xlu0 %763, %v53_v21   ;;  %644 = vmatprep.mubr.msk.f32.mxu1 %vm510_vm1, %v481_v57 }
  0x15   :  { %102 = vperm.xlu1 %764, %v52_v23  }
  0x16   :  { %687 = vmatmul.mubr.msk.f32.gmra.mxu0 %vm190_vm0, %v29_v16 }
  0x17   :  { %689 = vmatprep.mubr.msk.f32.mxu0 %vm190_vm0, %v30_v18 }
  0x18   :  { %97 = vperm.xlu0 %763, %v51_v25  }
  0x19   :  { %92 = vperm.xlu1 %764, %v50_v27  }
  0x1a   :  { %690 = vmatmul.mubr.msk.f32.gmra.mxu0 %vm190_vm0, %v31_v20 }
  0x1b   :  { %692 = vmatprep.mubr.msk.f32.mxu0 %vm190_vm0, %v32_v22 }
  0x1c   :  { %87 = vperm.xlu0 %763, %v49_v29  }
  0x1d   :  { %82 = vperm.xlu1 %764, %v48_v31  }
  0x1e   :  { %693 = vmatmul.mubr.msk.f32.gmra.mxu0 %vm190_vm0, %v33_v24 }
  0x1f   :  { %695 = vmatprep.mubr.msk.f32.mxu0 %vm190_vm0, %v34_v26 }
  0x20   :  { %77 = vperm.xlu0 %763, %v47_v33  }
  0x21   :  { %72 = vperm.xlu1 %764, %v46_v35  }
  0x22   :  { %696 = vmatmul.mubr.msk.f32.gmra.mxu0 %vm190_vm0, %v35_v28 }
  0x23   :  { %698 = vmatprep.mubr.msk.f32.mxu0 %vm190_vm0, %v36_v30 }
  0x24   :  { %187 = vperm.xlu0 %763, %v69_v37  }
  0x25   :  { %182 = vperm.xlu1 %764, %v68_v39  }
  0x26   :  { %699 = vmatmul.mubr.msk.f32.gmra.mxu0 %vm190_vm0, %v37_v32 }
  0x27   :  { %701 = vmatprep.mubr.msk.f32.mxu0 %vm190_vm0, %v38_v34 }
  0x28   :  { %177 = vperm.xlu0 %763, %v67_v41  }
  0x29   :  { %172 = vperm.xlu1 %764, %v66_v43  }
  0x2a   :  { %702 = vmatmul.mubr.msk.f32.gmra.mxu0 %vm190_vm0, %v39_v36 }
  0x2b   :  { %704 = vmatprep.mubr.msk.f32.mxu0 %vm190_vm0, %v40_v38 }
  0x2c   :  { %167 = vperm.xlu0 %763, %v65_v45  }
  0x2d   :  { %162 = vperm.xlu1 %764, %v64_v47  }
  0x2e   :  { %705 = vmatmul.mubr.msk.f32.gmra.mxu0 %vm190_vm0, %v41_v40 }
  0x2f   :  { %707 = vmatprep.mubr.msk.f32.mxu0 %vm190_vm0, %v42_v42 }
  0x30   :  { %157 = vperm.xlu0 %763, %v63_v49  }
  0x31   :  { %152 = vperm.xlu1 %764, %v62_v50  }
  0x32   :  { %708 = vmatmul.mubr.msk.f32.gmra.mxu0 %vm190_vm0, %v43_v44 }
  0x33   :  { %710 = vmatprep.mubr.msk.f32.mxu0 %vm190_vm0, %v44_v46 }
  0x34   :  { %492 = vperm.xlu0 %763, %v486_v51  }
  0x35   :  { %497 = vperm.xlu1 %764, %v487_v52  }
  0x36   :  { %711 = vmatmul.mubr.msk.f32.gmra.mxu0 %vm190_vm0, %v45_v48 }
  0x37   :  { %643 = vmatprep.mubr.msk.f32.mxu0 %vm510_vm1, %v479_v56 }
  0x38   :  { %502 = vperm.xlu0 %763, %v488_v53  }
  0x39   :  { %507 = vperm.xlu1 %764, %v489_v54  }
  0x7f   :  { %v148_v61 = vpop.permute.xlu0 %147 }
  0x80   :  { %v138_v63 = vpop.permute.xlu1 %137 }
  0x83   :  { %v143_v2 = vpop.permute.xlu0 %142 }
  0x84   :  { %v133_v4 = vpop.permute.xlu1 %132 }
  0x87   :  { %v128_v7 = vpop.permute.xlu0 %127 }
  0x88   :  { %v123_v9 = vpop.permute.xlu1 %122 }
  0x8b   :  { %v118_v12 = vpop.permute.xlu0 %117 }
  0x8c   :  { %v113_v14 = vpop.permute.xlu1 %112 }
  0x8f   :  { %v108_v18 = vpop.permute.xlu0 %107 }
  0x90   :  { %v103_v23 = vpop.permute.xlu1 %102 }
  0x93   :  { %v98_v30 = vpop.permute.xlu0 %97 }
  0x94   :  { %v93_v33 = vpop.permute.xlu1 %92 }
  0x97   :  { %v88_v39 = vpop.permute.xlu0 %87 }
  0x98   :  { %v83_v43 = vpop.permute.xlu1 %82 }
  0x9b   :  { %v78_v49 = vpop.permute.xlu0 %77 }
  0x9c   :  { %v73_v52 = vpop.permute.xlu1 %72 }
  0x9f   :  { %v188_v57 = vpop.permute.xlu0 %187 }
  0xca   :  { %v997_v58 = vpop.f32.mrf.mxu0 }
  0xcc   :  { %v999_v59 = vpop.f32.mrf.mxu0 }
  0xce   :  { %v1001_v60 = vpop.f32.mrf.mxu0 }
  0xcf   :  { %v351_v54 = vadd.f32 %v1001_v60, %v88_v39  ;;  %v341_v60 = vadd.f32 %v997_v58, %v78_v49 }
  0xd0   :  { %v1003_v62 = vpop.f32.mrf.mxu0 }
  0xd2   :  { %v1005_v0 = vpop.f32.mrf.mxu0 }
  0xd3   :  { %v361_v47 = vadd.f32 %v1005_v0, %v98_v30  ;;  %v183_v0 = vpop.permute.xlu1 %182  ;;  %v482_v30 = vld [vmem:[%s1116_s3 + $0x20] sm:$0xff] }
  0xd4   :  { %v1007_v1 = vpop.f32.mrf.mxu0 }
  0xd5   :  { %v356_v50 = vadd.f32 %v1007_v1, %v93_v33  ;;  %v459_v56 = vmax.f32 %v361_v47, 0.0 }
  0xd6   :  { %v688_v3 = vpop.f32.mrf.mxu0 }
  0xd7   :  { %v371_v41 = vadd.f32 %v688_v3, %v108_v18 }
  0xd8   :  { %v1009_v5 = vpop.f32.mrf.mxu0 }
  0xd9   :  { %v366_v44 = vadd.f32 %v1009_v5, %v103_v23  ;;  %v461_v48 = vmax.f32 %v371_v41, 0.0 }
  0xda   :  { %v691_v6 = vpop.f32.mrf.mxu0 }
  0xdb   :  { %v381_v35 = vadd.f32 %v691_v6, %v118_v12  ;;  %v460_v51 = vmax.f32 %v366_v44, 0.0  ;;  %v455_v6 = vmax.f32 %v341_v60, 0.0 }
  0xdc   :  { %v375_v8 = vpop.f32.mrf.mxu0 }
  0xdd   :  { %v376_v37 = vadd.f32 %v375_v8, %v113_v14  ;;  %v463_v42 = vmax.f32 %v381_v35, 0.0 }
  0xde   :  { %v694_v10 = vpop.f32.mrf.mxu0 }
  0xdf   :  { %v391_v28 = vadd.f32 %v694_v10, %v128_v7  ;;  %v462_v45 = vmax.f32 %v376_v37, 0.0  ;;  %v173_v7 = vpop.permute.xlu1 %172 }
  0xe0   :  { %v385_v11 = vpop.f32.mrf.mxu0 }
  0xe1   :  { %v386_v31 = vadd.f32 %v385_v11, %v123_v9  ;;  %v465_v36 = vmax.f32 %v391_v28, 0.0  ;;  %v480_v28 = vld [vmem:[%s1116_s3 + $0x10] sm:$0xff] }
  0xe2   :  { %v697_v13 = vpop.f32.mrf.mxu0 }
  0xe3   :  { %v401_v20 = vadd.f32 %v697_v13, %v138_v63  ;;  %v464_v38 = vmax.f32 %v386_v31, 0.0  ;;  %v458_v63 = vmax.f32 %v356_v50, 0.0  ;;  %v163_v14 = vpop.permute.xlu1 %162  ;;  %v485_v31 = vld [vmem:[%s1116_s3 + $0x38] sm:$0xff] }
  0xe4   :  { %v395_v15 = vpop.f32.mrf.mxu0 }
  0xe5   :  { %v396_v25 = vadd.f32 %v395_v15, %v133_v4  ;;  %v467_v29 = vmax.f32 %v401_v20, 0.0  ;;  %v178_v4 = vpop.permute.xlu0 %177 }
  0xe6   :  { %v700_v16 = vpop.f32.mrf.mxu0 }
  0xe7   :  { %v411_v17 = vadd.f32 %v700_v16, %v148_v61  ;;  %v466_v32 = vmax.f32 %v396_v25, 0.0  ;;  %v346_v61 = vadd.f32 %v1003_v62, %v83_v43  ;;  %v336_v62 = vadd.f32 %v999_v59, %v73_v52 }
  0xe8   :  { %v405_v19 = vpop.f32.mrf.mxu0 }
  0xe9   :  { %v469_v21 = vmax.f32 %v411_v17, 0.0  ;;  %v406_v22 = vadd.f32 %v405_v19, %v143_v2  ;;  %v457_v2 = vmax.f32 %v351_v54, 0.0  ;;  %v456_v3 = vmax.f32 %v346_v61, 0.0  ;;  %v168_v11 = vpop.permute.xlu0 %167 }
  0xea   :  { %v1011_v24 = vpop.f32.mrf.mxu0  ;;  %v454_v8 = vmax.f32 %v336_v62, 0.0 }
  0xeb   :  { %v468_v26 = vmax.f32 %v406_v22, 0.0  ;;  %524 = vmatpush1.msra.mxu0 %v469_v21  ;;  %737 = vmatpush1.msra.mxu1 %v469_v21  ;;  %v153_v22 = vpop.permute.xlu1 %152 }
  0xec   :  { %v1013_v27 = vpop.f32.mrf.mxu0  ;;  %525 = vmatprep.subr.mxu0 %v766_v55  ;;  %714 = vmatprep.subr.mxu1 %v766_v55 }
  0xed   :  { %526 = vmatpush1.msra.mxu0 %v468_v26  ;;  %738 = vmatpush1.msra.mxu1 %v468_v26  ;;  %v158_v19 = vpop.permute.xlu0 %157  ;;  %v416_v23 = vadd.f32 %v1013_v27, %v153_v22  ;;  %v478_v27 = vld [vmem:[%s1116_s3] sm:$0xff] }
  0xee   :  { %527 = vmatprep.subr.mxu0 %v766_v55  ;;  %715 = vmatprep.subr.mxu1 %v766_v55  ;;  %v1019_v34 = vpop.f32.mrf.mxu0  ;;  %v421_v20 = vadd.f32 %v1011_v24, %v158_v19 }
  0xef   :  { %528 = vmatpush1.msra.mxu0 %v467_v29  ;;  %739 = vmatpush1.msra.mxu1 %v467_v29  ;;  %v431_v15 = vadd.f32 %v1019_v34, %v168_v11  ;;  %v470_v24 = vmax.f32 %v416_v23, 0.0  ;;  %v483_v29 = vld [vmem:[%s1116_s3 + $0x28] sm:$0xff]  ;;  %v498_v33 = vpop.permute.xlu1 %497 }
  0xf0   :  { %529 = vmatprep.subr.mxu0 %v766_v55  ;;  %716 = vmatprep.subr.mxu1 %v766_v55  ;;  %v1025_v40 = vpop.f32.mrf.mxu0  ;;  %v471_v26 = vmax.f32 %v421_v20, 0.0 }
  0xf1   :  { %530 = vmatpush1.msra.mxu0 %v466_v32  ;;  %740 = vmatpush1.msra.mxu1 %v466_v32  ;;  %v426_v17 = vadd.f32 %v1025_v40, %v163_v14  ;;  %v473_v21 = vmax.f32 %v431_v15, 0.0  ;;  %v493_v32 = vpop.permute.xlu0 %492 }
  0xf2   :  { %531 = vmatprep.subr.mxu0 %v766_v55  ;;  %717 = vmatprep.subr.mxu1 %v766_v55  ;;  %v709_v46 = vpop.f32.mrf.mxu0 }
  0xf3   :  { %532 = vmatpush1.msra.mxu0 %v465_v36  ;;  %741 = vmatpush1.msra.mxu1 %v465_v36  ;;  %v441_v9 = vadd.f32 %v709_v46, %v178_v4  ;;  %v472_v25 = vmax.f32 %v426_v17, 0.0  ;;  %v508_v44 = vpop.permute.xlu1 %507 }
  0xf4   :  { %533 = vmatprep.subr.mxu0 %v766_v55  ;;  %718 = vmatprep.subr.mxu1 %v766_v55  ;;  %v435_v53 = vpop.f32.mrf.mxu0 }
  0xf5   :  { %534 = vmatpush1.msra.mxu0 %v464_v38  ;;  %742 = vmatpush1.msra.mxu1 %v464_v38  ;;  %v436_v12 = vadd.f32 %v435_v53, %v173_v7  ;;  %v475_v16 = vmax.f32 %v441_v9, 0.0  ;;  %v503_v40 = vpop.permute.xlu0 %502 }
  0xf6   :  { %535 = vmatprep.subr.mxu0 %v766_v55  ;;  %719 = vmatprep.subr.mxu1 %v766_v55  ;;  %v712_v1 = vpop.f32.mrf.mxu0 }
  0xf7   :  { %536 = vmatpush1.msra.mxu0 %v463_v42  ;;  %743 = vmatpush1.msra.mxu1 %v463_v42  ;;  %v451_v58 = vadd.f32 %v712_v1, %v188_v57  ;;  %v474_v18 = vmax.f32 %v436_v12, 0.0 }
  0xf8   :  { %537 = vmatprep.subr.mxu0 %v766_v55  ;;  %720 = vmatprep.subr.mxu1 %v766_v55  ;;  %v445_v5 = vpop.f32.mrf.mxu0 }
  0xf9   :  { %538 = vmatpush1.msra.mxu0 %v462_v45  ;;  %744 = vmatpush1.msra.mxu1 %v462_v45  ;;  %v446_v59 = vadd.f32 %v445_v5, %v183_v0  ;;  %v477_v10 = vmax.f32 %v451_v58, 0.0 }
  0xfa   :  { %539 = vmatprep.subr.mxu0 %v766_v55  ;;  %721 = vmatprep.subr.mxu1 %v766_v55 }
  0xfb   :  { %540 = vmatpush1.msra.mxu0 %v461_v48  ;;  %745 = vmatpush1.msra.mxu1 %v461_v48  ;;  %v476_v13 = vmax.f32 %v446_v59, 0.0 }
  0xfc   :  { %541 = vmatprep.subr.mxu0 %v766_v55  ;;  %722 = vmatprep.subr.mxu1 %v766_v55 }
  0xfd   :  { %542 = vmatpush1.msra.mxu0 %v460_v51  ;;  %746 = vmatpush1.msra.mxu1 %v460_v51 }
  0xfe   :  { %543 = vmatprep.subr.mxu0 %v766_v55  ;;  %723 = vmatprep.subr.mxu1 %v766_v55 }
  0xff   :  { %544 = vmatpush1.msra.mxu0 %v459_v56  ;;  %747 = vmatpush1.msra.mxu1 %v459_v56 }
 0x100   :  { %545 = vmatprep.subr.mxu0 %v766_v55  ;;  %724 = vmatprep.subr.mxu1 %v766_v55 }
 0x101   :  { %546 = vmatpush1.msra.mxu0 %v458_v63  ;;  %748 = vmatpush1.msra.mxu1 %v458_v63 }
 0x102   :  { %547 = vmatprep.subr.mxu0 %v766_v55  ;;  %725 = vmatprep.subr.mxu1 %v766_v55 }
 0x103   :  { %548 = vmatpush1.msra.mxu0 %v457_v2  ;;  %749 = vmatpush1.msra.mxu1 %v457_v2 }
 0x104   :  { %549 = vmatprep.subr.mxu0 %v766_v55  ;;  %726 = vmatprep.subr.mxu1 %v766_v55 }
 0x105   :  { %550 = vmatpush1.msra.mxu0 %v456_v3  ;;  %750 = vmatpush1.msra.mxu1 %v456_v3 }
 0x106   :  { %551 = vmatprep.subr.mxu0 %v766_v55  ;;  %727 = vmatprep.subr.mxu1 %v766_v55 }
 0x107   :  { %552 = vmatpush1.msra.mxu0 %v455_v6  ;;  %751 = vmatpush1.msra.mxu1 %v455_v6 }
 0x108   :  { %553 = vmatprep.subr.mxu0 %v766_v55  ;;  %728 = vmatprep.subr.mxu1 %v766_v55 }
 0x109   :  { %554 = vmatpush1.msra.mxu0 %v454_v8  ;;  %752 = vmatpush1.msra.mxu1 %v454_v8 }
 0x10a   :  { %571 = vmatprep.subr.mxu0 %v766_v55  ;;  %729 = vmatprep.subr.mxu1 %v766_v55 }
 0x10b   :  { %572 = vmatpush2.msra.mxu0 %v477_v10  ;;  %753 = vmatpush2.msra.mxu1 %v477_v10 }
 0x10c   :  { %573 = vmatprep.subr.mxu0 %v766_v55  ;;  %730 = vmatprep.subr.mxu1 %v766_v55 }
 0x10d   :  { %574 = vmatpush2.msra.mxu0 %v476_v13  ;;  %754 = vmatpush2.msra.mxu1 %v476_v13 }
 0x10e   :  { %575 = vmatprep.subr.mxu0 %v766_v55  ;;  %731 = vmatprep.subr.mxu1 %v766_v55 }
 0x10f   :  { %576 = vmatpush2.msra.mxu0 %v475_v16  ;;  %755 = vmatpush2.msra.mxu1 %v475_v16 }
 0x110   :  { %577 = vmatprep.subr.mxu0 %v766_v55  ;;  %732 = vmatprep.subr.mxu1 %v766_v55 }
 0x111   :  { %578 = vmatpush2.msra.mxu0 %v474_v18  ;;  %756 = vmatpush2.msra.mxu1 %v474_v18 }
 0x112   :  { %579 = vmatprep.subr.mxu0 %v766_v55  ;;  %733 = vmatprep.subr.mxu1 %v766_v55 }
 0x113   :  { %580 = vmatpush2.msra.mxu0 %v473_v21  ;;  %757 = vmatpush2.msra.mxu1 %v473_v21 }
 0x114   :  { %581 = vmatprep.subr.mxu0 %v766_v55  ;;  %734 = vmatprep.subr.mxu1 %v766_v55 }
 0x115   :  { %582 = vmatpush2.msra.mxu0 %v472_v25  ;;  %758 = vmatpush2.msra.mxu1 %v472_v25 }
 0x116   :  { %583 = vmatprep.subr.mxu0 %v766_v55  ;;  %735 = vmatprep.subr.mxu1 %v766_v55 }
 0x117   :  { %584 = vmatpush2.msra.mxu0 %v471_v26  ;;  %759 = vmatpush2.msra.mxu1 %v471_v26 }
 0x118   :  { %585 = vmatprep.subr.mxu0 %v766_v55  ;;  %736 = vmatprep.subr.mxu1 %v766_v55  ;;  %v484_v55 = vld [vmem:[%s1116_s3 + $0x30] sm:$0xff] }
 0x119   :  { %586 = vmatpush2.msra.mxu0 %v470_v24  ;;  %760 = vmatpush2.msra.mxu1 %v470_v24 }
 0x11a   :  { %588 = vmatmul.mubr.f32.vlgmr.msra.gmra.mxu0 %v478_v27  ;;  %593 = vmatmul.mubr.f32.vlgmr.msra.gmra.mxu1 %v480_v28 }
 0x11b   :  { %645 = vmatprep.mubr.msk.f32.mxu1 %vm510_vm1, %v483_v29 }
 0x11e   :  { %598 = vmatmul.mubr.f32.gmra.mxu1 %v482_v30 }
 0x11f   :  { %646 = vmatprep.mubr.msk.f32.mxu1 %vm510_vm1, %v485_v31 }
 0x122   :  { %603 = vmatmul.mubr.f32.gmra.mxu1 %v484_v55 }
 0x1da   :  { %v589_v34 = vpop.f32.mrf.mxu0  ;;  %v594_v35 = vpop.f32.mrf.mxu1 }
 0x1db   :  { %v590_v36 = vadd.f32 %v589_v34, %v493_v32  ;;  %v595_v37 = vadd.f32 %v594_v35, %v498_v33 }
 0x1dc   :  { %v596_v38 = vpop.f32.mrf.mxu1  ;;  %v591_v39 = vpop.f32.mrf.mxu0 }
 0x1dd   :  { %609 = vst.msk [vmem:[%s1117_s5] sm:$0xff] %vm608_vm2, %v590_v36  ;;  %610 = vst.msk [vmem:[%s1117_s5 + $0x8] sm:$0xff] %vm608_vm2, %v595_v37 }
 0x1de   :  { %v599_v41 = vpop.f32.mrf.mxu1 }
 0x1df   :  { %v600_v42 = vadd.f32 %v599_v41, %v503_v40 }
 0x1e0   :  { %v601_v43 = vpop.f32.mrf.mxu1 }
 0x1e1   :  { %611 = vst.msk [vmem:[%s1117_s5 + $0x10] sm:$0xff] %vm608_vm2, %v600_v42 }
 0x1e2   :  { %v604_v45 = vpop.f32.mrf.mxu1 }
 0x1e3   :  { %v605_v46 = vadd.f32 %v604_v45, %v508_v44 }
 0x1e4   :  { %v606_v47 = vpop.f32.mrf.mxu1 }
 0x1e5   :  { %612 = vst.msk [vmem:[%s1117_s5 + $0x18] sm:$0xff] %vm608_vm2, %v605_v46 }

</bundles_post_ra>
